<compile_context>
chip_gen: v7x
topology: tpu7x:2x2x1
jax: 0.10.0
libtpu: 0.0.40
codegen_flags: <defaults>
</compile_context>

<pallas_src>
import functools
import math

import numpy as np
import jax
import jax.numpy as jnp
from jax.experimental import pallas as pl
from jax.experimental.pallas import tpu as pltpu

LANE = 128


# ---------------------------------------------------------------------------
# Synthetic replacement for tcnn's `_C.grid_offset` (hash-grid level offsets).
# ---------------------------------------------------------------------------
def grid_offsets(n_levels, log2_hashmap_size, base_resolution,
                 per_level_scale, n_features_per_level, n_dims):
    offsets = [0]
    offset = 0
    for lvl in range(n_levels):
        scale = base_resolution * (per_level_scale ** lvl) - 1.0
        res = int(math.ceil(scale)) + 1
        params_in_level = res ** n_dims
        params_in_level = min(params_in_level, 2 ** log2_hashmap_size)
        params_in_level = ((params_in_level + 7) // 8) * 8  # align to 8 like tcnn
        offset += params_in_level * n_features_per_level
        offsets.append(offset)
    return offsets


def make_scale(offsets, dtype=jnp.float32):
    """Reference: scale[offsets[i]:offsets[i+1]] = 1 / (offsets[i+1]-offsets[i])."""
    n = offsets[-1]
    scale = jnp.ones((n,), dtype=dtype)
    for i in range(len(offsets) - 1):
        size = offsets[i + 1] - offsets[i]
        scale = scale.at[offsets[i]:offsets[i + 1]].divide(float(size))
    return scale


# ---------------------------------------------------------------------------
# Hardware query: number of TensorCores per chip (1 on v5e/v6e, 2 on v7x).
# Conservative: fall back to 1 unless an unambiguous per-chip TC count exists.
# ---------------------------------------------------------------------------
def _num_tensorcores():
    try:
        info = pltpu.get_tpu_info()
    except Exception:
        return 1
    for name in ("tensorcores_per_chip", "num_tensorcores", "num_tensor_cores",
                 "tensor_cores_per_chip", "cores_per_chip"):
        v = getattr(info, name, None)
        if isinstance(v, (int, np.integer)) and 1 <= int(v) <= 8:
            return min(int(v), 2)
    return 1


# ---------------------------------------------------------------------------
# Static per-grid-step scale tables (everything is Python ints -> built once).
# ---------------------------------------------------------------------------
def _build_tables(offsets, n_eff, tile_elems, n_cores, bpc, total_blocks):
    n = offsets[-1]
    n_levels = len(offsets) - 1
    inv = [1.0 / (offsets[i + 1] - offsets[i]) for i in range(n_levels)]
    # Scale change points: (global element index, value from there onward).
    # The final entry folds the params-cutoff ("scale -> 0 past n") into the chain.
    changes = [(offsets[l], inv[l]) for l in range(1, n_levels)] + [(n, 0.0)]

    def value_at(pos):
        if pos >= n:
            return 0.0
        for l in range(n_levels):
            if pos < offsets[l + 1]:
                return inv[l]
        return 0.0

    steps = n_cores * bpc
    base = np.zeros((steps,), np.float32)
    cut = np.zeros((steps,), np.int32)
    simple = np.zeros((steps,), np.int32)
    per_step = []
    for s in range(steps):
        blk = min(s, total_blocks - 1)
        s0, s1 = blk * tile_elems, blk * tile_elems + tile_elems
        if s != blk:
            # Clamped duplicate step (odd block split on the multi-core path):
            # base 0 + cut 0 -> the full path zeroes it regardless of contents.
            per_step.append([])
            continue
        ch = [(p - s0, v) for (p, v) in changes if s0 < p < s1]   # tile-local
        base[s] = value_at(s0)
        cut[s] = min(n_eff - s0, tile_elems)
        # "simple": fully in-bounds data with at most one scale change.
        simple[s] = int(len(ch) <= 1 and s1 <= n_eff)
        per_step.append(ch)

    k_tab = max(1, max((len(c) for c in per_step), default=0))
    lob = np.full((k_tab, steps), tile_elems, np.int32)   # sentinel: never reached
    val = np.zeros((k_tab, steps), np.float32)
    for s, ch in enumerate(per_step):
        for q, (b, v) in enumerate(ch):
            lob[q, s] = b
            val[q, s] = v
    has_simple = bool((simple == 1).any())
    has_full = bool((simple == 0).any())
    return simple, base, cut, lob, val, k_tab, has_simple, has_full


# ---------------------------------------------------------------------------
# Pallas kernel.
# ---------------------------------------------------------------------------
def _make_kernel(*, bpc, k_tab, acc_rows, has_simple, has_full):
    def kernel(simple_ref, binv_ref, cut_ref, lob_ref, val_ref,
               p_ref, out_ref, acc_ref):
        j = pl.program_id(1)
        step = pl.program_id(0) * bpc + j
        tr, lane = p_ref.shape

        @pl.when(j == 0)
        def _init():
            acc_ref[...] = jnp.zeros_like(acc_ref)

        # Grid-invariant tile-local flat index (boundaries are stored tile-local,
        # so no per-step index arithmetic is needed on the vregs).
        row = jax.lax.broadcasted_iota(jnp.int32, (tr, lane), 0)
        col = jax.lax.broadcasted_iota(jnp.int32, (tr, lane), 1)
        local = row * lane + col

        def accumulate(contrib):
            # Fold (tr,128) down to the small resident accumulator.  Each link
            # of the fold spans acc_rows/8 (>=1) full vregs, so there are >=8
            # independent add chains; only acc_rows/8 vregs hit VMEM per step.
            if tr == acc_rows:
                acc_ref[...] += contrib
            else:
                acc_ref[...] += contrib.reshape(-1, acc_rows, lane).sum(axis=0)

        def base_scale():
            return jnp.full((tr, lane), binv_ref[step], dtype=jnp.float32)

        def cheap_path():
            # Hot path: one splat + at most one compare/select.
            scale = jnp.where(local >= lob_ref[0, step], val_ref[0, step],
                              base_scale())
            p = p_ref[...].astype(jnp.float32)
            accumulate(scale * p * p)

        def full_path():
            # Cold path: statically-bounded boundary chain + OOB cut select
            # (head tile, params-cutoff tile, ragged/duplicate edge tiles).
            scale = base_scale()
            for q in range(k_tab):
                scale = jnp.where(local >= lob_ref[q, step],
                                  val_ref[q, step], scale)
            p = p_ref[...].astype(jnp.float32)
            accumulate(jnp.where(local < cut_ref[step], scale * p * p, 0.0))

        if has_simple and has_full:
            pl.when(simple_ref[step] == 1)(cheap_path)
            pl.when(simple_ref[step] == 0)(full_path)
        elif has_full:
            full_path()
        else:
            cheap_path()

        @pl.when(j == pl.num_programs(1) - 1)
        def _flush():
            # One cross-sublane XLU reduce per core, off the hot loop.
            out_ref[...] = jnp.sum(acc_ref[...], axis=0, keepdims=True)

    return kernel


# ---------------------------------------------------------------------------
# Wrapper.
# ---------------------------------------------------------------------------
def grid_decay_loss(params, offsets, *, tile_rows=4096, n_cores=None):
    """(scale * params[:offsets[-1]] ** 2).sum() with scale = 1/level_size."""
    offsets = [int(o) for o in offsets]
    assert offsets[0] == 0 and all(b > a for a, b in zip(offsets[:-1], offsets[1:])), \
        "offsets must start at 0 and be strictly increasing"
    n = offsets[-1]
    total = int(params.shape[0])
    assert total >= n, "params must cover the full grid"

    # 2-D lane-major view of params covering >= n elements (copy-free when the
    # parameter count is already a multiple of 128).
    if total % LANE == 0:
        p2d = params.reshape(-1, LANE)
    else:
        n128 = pl.cdiv(n, LANE) * LANE
        if total >= n128:
            p2d = jax.lax.slice(params, (0,), (n128,)).reshape(-1, LANE)
        else:  # total == n, ragged tail: one small pad copy
            p2d = jnp.pad(params, (0, n128 - total)).reshape(-1, LANE)
    rows = p2d.shape[0]
    n_eff = rows * LANE

    # Tiling: one big block when everything fits, otherwise (16,128)-aligned
    # blocks (bf16-safe) with a masked partial last block.
    if rows <= tile_rows:
        tile_rows_eff = rows
    else:
        tile_rows_eff = max(16, (tile_rows // 16) * 16)
    total_blocks = pl.cdiv(rows, tile_rows_eff)
    tile_elems = tile_rows_eff * LANE

    if n_cores is None:
        n_cores = _num_tensorcores()
    n_cores = max(1, min(int(n_cores), total_blocks))
    bpc = pl.cdiv(total_blocks, n_cores)          # contiguous blocks per core

    simple, base, cut, lob, val, k_tab, has_simple, has_full = _build_tables(
        offsets, n_eff, tile_elems, n_cores, bpc, total_blocks)

    # Small resident accumulator (multiple of a full f32 vreg when possible).
    acc_rows = tile_rows_eff
    for cand in (64, 32, 16, 8):
        if tile_rows_eff % cand == 0:
            acc_rows = cand
            break

    kernel = _make_kernel(bpc=bpc, k_tab=k_tab, acc_rows=acc_rows,
                          has_simple=has_simple, has_full=has_full)

    def p_index_map(c, j, *_):
        # Clamp so the DMA never walks past the array; clamped duplicate steps
        # are zeroed through the per-step tables.
        return (jnp.minimum(c * bpc + j, total_blocks - 1), 0)

    if n_cores > 1:
        dsem = (pltpu.CORE_PARALLEL, pltpu.ARBITRARY)   # real 2-TC split (v7x)
    else:
        dsem = (pltpu.ARBITRARY, pltpu.ARBITRARY)

    partials = pl.pallas_call(
        kernel,
        out_shape=jax.ShapeDtypeStruct((n_cores, 1, LANE), jnp.float32),
        grid_spec=pltpu.PrefetchScalarGridSpec(
            num_scalar_prefetch=5,
            grid=(n_cores, bpc),
            in_specs=[pl.BlockSpec((tile_rows_eff, LANE), p_index_map)],
            out_specs=pl.BlockSpec((None, 1, LANE), lambda c, j, *_: (c, 0, 0)),
            scratch_shapes=[pltpu.VMEM((acc_rows, LANE), jnp.float32)],
        ),
        compiler_params=pltpu.CompilerParams(dimension_semantics=dsem),
    )(jnp.asarray(simple), jnp.asarray(base), jnp.asarray(cut),
      jnp.asarray(lob), jnp.asarray(val), p2d)

    # Tiny (n_cores x 128) reduce; fuses into the caller's jit region.
    return jnp.sum(partials)


# ---------------------------------------------------------------------------
# Main
# ---------------------------------------------------------------------------
if __name__ == "__main__":
    def run_case(cfg, tile_rows, dtype=jnp.float32):
        offsets = grid_offsets(**cfg)
        n_params = offsets[-1]
        key = jax.random.PRNGKey(0)
        params = jax.random.normal(key, (n_params,), dtype=jnp.float32).astype(dtype)

        loss_fn = jax.jit(functools.partial(
            grid_decay_loss, offsets=offsets, tile_rows=tile_rows))
        loss = jax.block_until_ready(loss_fn(params))

        ref = jnp.sum(make_scale(offsets) * params.astype(jnp.float32) ** 2)
        assert jnp.allclose(loss, ref, rtol=1e-4, atol=1e-6), (loss, ref)

    small_cfg = dict(n_levels=4, log2_hashmap_size=8, base_resolution=4,
                     per_level_scale=1.5, n_features_per_level=2, n_dims=2)
    large_cfg = dict(n_levels=16, log2_hashmap_size=14, base_resolution=16,
                     per_level_scale=1.5, n_features_per_level=2, n_dims=3)

    # 688 params: pad path, single ragged block, full (boundary-dense) path.
    run_case(small_cfg, tile_rows=4096)
    # ~494K params, single aligned 2 MiB block.
    run_case(large_cfg, tile_rows=4096)
    # Same grid, multi-block: cheap/full pl.when routing + partial last block.
    run_case(large_cfg, tile_rows=256)
    # bf16 parameter stream (upcast-on-load, (16,128)-aligned blocks).
    run_case(large_cfg, tile_rows=256, dtype=jnp.bfloat16)

    print("KERNEL_OK")
</pallas_src>

<mosaic_0001>
module attributes {stable_mosaic.version = 11 : i64} {
  func.func @kernel(%arg0: i32, %arg1: i32, %arg2: memref<1xi32, #tpu.memory_space<smem>>, %arg3: memref<1xf32, #tpu.memory_space<smem>>, %arg4: memref<1xi32, #tpu.memory_space<smem>>, %arg5: memref<4x1xi32, #tpu.memory_space<smem>>, %arg6: memref<4x1xf32, #tpu.memory_space<smem>>, %arg7: memref<6x128xf32, #tpu.memory_space<vmem>>, %arg8: memref<1x1x128xf32, #tpu.memory_space<vmem>>, %arg9: memref<6x128xf32, #tpu.memory_space<vmem>>) attributes {dimension_semantics = [#tpu.dimension_semantics<arbitrary>, #tpu.dimension_semantics<arbitrary>], iteration_bounds = array<i64: 1, 1>, scalar_prefetch = 5 : i64, scratch_operands = 1 : i64, tpu.core_type = #tpu.core_type<tc>, window_params = [{transform_indices = @transform_0, window_bounds = array<i64: 6, 128>}, {transform_indices = @transform_1, window_bounds = array<i64: 1, 1, 128>}]} {
    %c1_i32 = arith.constant 1 : i32
    %0 = arith.muli %arg0, %c1_i32 : i32
    %1 = arith.addi %0, %arg1 : i32
    %c0_i32 = arith.constant 0 : i32
    %2 = arith.cmpi eq, %arg1, %c0_i32 : i32
    %3 = arith.extui %2 : i1 to i32
    %c0_i32_0 = arith.constant 0 : i32
    %4 = arith.cmpi ne, %3, %c0_i32_0 : i32
    scf.if %4 {
      %cst_13 = arith.constant 0.000000e+00 : f32
      %60 = vector.broadcast %cst_13 : f32 to vector<6x128xf32>
      %c0_14 = arith.constant 0 : index
      %c0_15 = arith.constant 0 : index
      %61 = vector.load %arg9[%c0_14, %c0_15] : memref<6x128xf32, #tpu.memory_space<vmem>>, vector<6x128xf32>
      tpu.vector_store %arg9[%c0_14, %c0_15], %60 {strides = array<i32>} : memref<6x128xf32, #tpu.memory_space<vmem>>, vector<6x128xf32>,
    } else {
    }
    %5 = tpu.iota {dimensions = array<i32: 0>} : vector<6x128xi32>
    %6 = tpu.iota {dimensions = array<i32: 1>} : vector<6x128xi32>
    %c128_i32 = arith.constant 128 : i32
    %7 = vector.broadcast %c128_i32 : i32 to vector<6x128xi32>
    %8 = arith.muli %5, %7 : vector<6x128xi32>
    %9 = arith.addi %8, %6 : vector<6x128xi32>
    %10 = arith.index_cast %1 : i32 to index
    %11 = memref.load %arg3[%10] : memref<1xf32, #tpu.memory_space<smem>>
    %12 = vector.broadcast %11 : f32 to vector<6x128xf32>
    %c0 = arith.constant 0 : index
    %13 = arith.index_cast %1 : i32 to index
    %14 = memref.load %arg5[%c0, %13] : memref<4x1xi32, #tpu.memory_space<smem>>
    %15 = vector.broadcast %14 : i32 to vector<6x128xi32>
    %16 = arith.cmpi sge, %9, %15 : vector<6x128xi32>
    %c0_1 = arith.constant 0 : index
    %17 = arith.index_cast %1 : i32 to index
    %18 = memref.load %arg6[%c0_1, %17] : memref<4x1xf32, #tpu.memory_space<smem>>
    %19 = vector.broadcast %18 : f32 to vector<6x128xf32>
    %20 = arith.select %16, %19, %12 : vector<6x128xi1>, vector<6x128xf32>
    %c1 = arith.constant 1 : index
    %21 = arith.index_cast %1 : i32 to index
    %22 = memref.load %arg5[%c1, %21] : memref<4x1xi32, #tpu.memory_space<smem>>
    %23 = vector.broadcast %22 : i32 to vector<6x128xi32>
    %24 = arith.cmpi sge, %9, %23 : vector<6x128xi32>
    %c1_2 = arith.constant 1 : index
    %25 = arith.index_cast %1 : i32 to index
    %26 = memref.load %arg6[%c1_2, %25] : memref<4x1xf32, #tpu.memory_space<smem>>
    %27 = vector.broadcast %26 : f32 to vector<6x128xf32>
    %28 = arith.select %24, %27, %20 : vector<6x128xi1>, vector<6x128xf32>
    %c2 = arith.constant 2 : index
    %29 = arith.index_cast %1 : i32 to index
    %30 = memref.load %arg5[%c2, %29] : memref<4x1xi32, #tpu.memory_space<smem>>
    %31 = vector.broadcast %30 : i32 to vector<6x128xi32>
    %32 = arith.cmpi sge, %9, %31 : vector<6x128xi32>
    %c2_3 = arith.constant 2 : index
    %33 = arith.index_cast %1 : i32 to index
    %34 = memref.load %arg6[%c2_3, %33] : memref<4x1xf32, #tpu.memory_space<smem>>
    %35 = vector.broadcast %34 : f32 to vector<6x128xf32>
    %36 = arith.select %32, %35, %28 : vector<6x128xi1>, vector<6x128xf32>
    %c3 = arith.constant 3 : index
    %37 = arith.index_cast %1 : i32 to index
    %38 = memref.load %arg5[%c3, %37] : memref<4x1xi32, #tpu.memory_space<smem>>
    %39 = vector.broadcast %38 : i32 to vector<6x128xi32>
    %40 = arith.cmpi sge, %9, %39 : vector<6x128xi32>
    %c3_4 = arith.constant 3 : index
    %41 = arith.index_cast %1 : i32 to index
    %42 = memref.load %arg6[%c3_4, %41] : memref<4x1xf32, #tpu.memory_space<smem>>
    %43 = vector.broadcast %42 : f32 to vector<6x128xf32>
    %44 = arith.select %40, %43, %36 : vector<6x128xi1>, vector<6x128xf32>
    %c0_5 = arith.constant 0 : index
    %c0_6 = arith.constant 0 : index
    %45 = vector.load %arg7[%c0_5, %c0_6] : memref<6x128xf32, #tpu.memory_space<vmem>>, vector<6x128xf32>
    %46 = arith.index_cast %1 : i32 to index
    %47 = memref.load %arg4[%46] : memref<1xi32, #tpu.memory_space<smem>>
    %48 = vector.broadcast %47 : i32 to vector<6x128xi32>
    %49 = arith.cmpi slt, %9, %48 : vector<6x128xi32>
    %50 = arith.mulf %44, %45 : vector<6x128xf32>
    %51 = arith.mulf %50, %45 : vector<6x128xf32>
    %cst = arith.constant 0.000000e+00 : f32
    %52 = vector.broadcast %cst : f32 to vector<6x128xf32>
    %53 = arith.select %49, %51, %52 : vector<6x128xi1>, vector<6x128xf32>
    %c0_7 = arith.constant 0 : index
    %c0_8 = arith.constant 0 : index
    %54 = vector.load %arg9[%c0_7, %c0_8] : memref<6x128xf32, #tpu.memory_space<vmem>>, vector<6x128xf32>
    %55 = arith.addf %54, %53 : vector<6x128xf32>
    %c0_9 = arith.constant 0 : index
    %c0_10 = arith.constant 0 : index
    %56 = vector.load %arg9[%c0_9, %c0_10] : memref<6x128xf32, #tpu.memory_space<vmem>>, vector<6x128xf32>
    tpu.vector_store %arg9[%c0_9, %c0_10], %55 {strides = array<i32>} : memref<6x128xf32, #tpu.memory_space<vmem>>, vector<6x128xf32>,
    %c0_i32_11 = arith.constant 0 : i32
    %57 = arith.cmpi eq, %arg1, %c0_i32_11 : i32
    %58 = arith.extui %57 : i1 to i32
    %c0_i32_12 = arith.constant 0 : i32
    %59 = arith.cmpi ne, %58, %c0_i32_12 : i32
    scf.if %59 {
      %c0_13 = arith.constant 0 : index
      %c0_14 = arith.constant 0 : index
      %60 = vector.load %arg9[%c0_13, %c0_14] : memref<6x128xf32, #tpu.memory_space<vmem>>, vector<6x128xf32>
      %cst_15 = arith.constant dense<0.000000e+00> : vector<128xf32>
      %61 = vector.multi_reduction <add>, %60, %cst_15 [0] : vector<6x128xf32> to vector<128xf32>
      %62 = vector.shape_cast %61 : vector<128xf32> to vector<1x128xf32>
      %c0_16 = arith.constant 0 : index
      %c0_17 = arith.constant 0 : index
      %c0_18 = arith.constant 0 : index
      %63 = vector.load %arg8[%c0_16, %c0_17, %c0_18] : memref<1x1x128xf32, #tpu.memory_space<vmem>>, vector<1x1x128xf32>
      %64 = vector.shape_cast %63 : vector<1x1x128xf32> to vector<1x128xf32>
      %65 = vector.shape_cast %62 : vector<1x128xf32> to vector<1x1x128xf32>
      tpu.vector_store %arg8[%c0_16, %c0_17, %c0_18], %65 {strides = array<i32>} : memref<1x1x128xf32, #tpu.memory_space<vmem>>, vector<1x1x128xf32>,
    } else {
    }
    return
  }
  func.func @transform_0(%arg0: i32, %arg1: i32, %arg2: memref<1xi32, #tpu.memory_space<smem>>, %arg3: memref<1xf32, #tpu.memory_space<smem>>, %arg4: memref<1xi32, #tpu.memory_space<smem>>, %arg5: memref<4x1xi32, #tpu.memory_space<smem>>, %arg6: memref<4x1xf32, #tpu.memory_space<smem>>) -> (i32, i32) {
    %c1_i32 = arith.constant 1 : i32
    %0 = arith.muli %arg0, %c1_i32 : i32
    %1 = arith.addi %0, %arg1 : i32
    %c0_i32 = arith.constant 0 : i32
    %2 = arith.minsi %1, %c0_i32 : i32
    %c0_i32_0 = arith.constant 0 : i32
    %c0_i32_1 = arith.constant 0 : i32
    return %2, %c0_i32_0 : i32, i32
  }
  func.func @transform_1(%arg0: i32, %arg1: i32, %arg2: memref<1xi32, #tpu.memory_space<smem>>, %arg3: memref<1xf32, #tpu.memory_space<smem>>, %arg4: memref<1xi32, #tpu.memory_space<smem>>, %arg5: memref<4x1xi32, #tpu.memory_space<smem>>, %arg6: memref<4x1xf32, #tpu.memory_space<smem>>) -> (i32, i32, i32) {
    %c0_i32 = arith.constant 0 : i32
    %c0_i32_0 = arith.constant 0 : i32
    %c0_i32_1 = arith.constant 0 : i32
    return %arg0, %c0_i32, %c0_i32_0 : i32, i32, i32
  }
}

</mosaic_0001>

<bundles_post_ra>
// kernel: grid_decay_loss.1
= control target key start
LH: loop header
LB: loop body
LE: loop exit
PB: predicated region body
PF: predicated region fallthrough
CT: control target
= control target key end

     0   :  { %s228_s0 = inlined_call_operand.<no memory space> [shape: s32[1], index: 0, kind: input, shape index: {}]   ;;  %s229_s1 = inlined_call_operand.<no memory space> [shape: f32[1], index: 1, kind: input, shape index: {}]   ;;  %s230_s2 = inlined_call_operand.<no memory space> [shape: s32[1], index: 2, kind: input, shape index: {}]   ;;  %s231_s3 = inlined_call_operand.vmem [shape: s32[4,1], index: 3, kind: input, shape index: {}]   ;;  %s232_s5 = inlined_call_operand.vmem [shape: f32[6,128], index: 5, kind: input, shape index: {}]   ;;  %s233_s6 = inlined_call_operand.vmem [shape: f32[1,1,128], index: 6, kind: output, shape index: {}]   ;;  %s234_s4 = inlined_call_operand.vmem [shape: f32[4,1], index: 4, kind: input, shape index: {}]  }
   0x1   :  { %s14_s22 = sshll.u32 %s231_s3, 4  ;;  %s18_s25 = sshll.u32 %s234_s4, 4  ;;  %s15_s22 = int_to_ptr.vmem [resolvable:$true] %s14_s22  ;;  %s19_s25 = int_to_ptr.vmem [resolvable:$true] %s18_s25 }
   0x2   :  { %s146_s26 = scalar_lea.vmem %s15_s22, 64  ;;  %p151_p1 = scmp.lt.s32.totalorder %s15_s22, %s15_s22 }
   0x3   :  { %p147_p0 = scmp.ne.s32.totalorder %s15_s22, %s146_s26  ;;  %p152_p2 = scmp.lt.s32.totalorder %s146_s26, %s146_s26 }
   0x5   :  { %p153_p3 = por %p152_p2, %p151_p1 }
   0x7   :  { %p154_p4 = pnand %p153_p3, %p147_p0 }
   0x9   :  { %157 = shalt.err (!%p154_p4)  }
   0xa   :  { %s172_s27 = smov [#allocation7]   ;;  %s158_s28 = scalar_lea.vmem %s19_s25, 64 }
   0xb   :  { %17 = dma.vmem_to_smem %s15_s22, 64, %s172_s27, [#allocation3] }
   0xc   :  { %p159_p5 = scmp.ne.s32.totalorder %s19_s25, %s158_s28  ;;  %p163_p6 = scmp.lt.s32.totalorder %s19_s25, %s19_s25 }
   0xd   :  { %p164_p7 = scmp.lt.s32.totalorder %s158_s28, %s158_s28 }
   0xf   :  { %p165_p8 = por %p164_p7, %p163_p6 }
  0x11   :  { %p166_p9 = pnand %p165_p8, %p159_p5 }
  0x13   :  { %169 = shalt.err (!%p166_p9)  }
  0x14   :  { %s173_s3 = smov [#allocation8]  }
  0x15   :  { %21 = dma.vmem_to_smem %s19_s25, 64, %s173_s3, [#allocation3] }
  0x16   :  { %170 = dma.done.wait [#allocation3], 128 }
  0x17   :  { %171 = vsyncadd [#allocation3], 4294967168 }
  0x18   :  { %23 = sfence }
  0x19   :  { %v59_v0 = vlaneseq  ;;  %s67_s4 = sld [smem:[#allocation7]]  ;;  %v174_v1 = vmov 0.0   ;;  %v66_v6 = vstv %s229_s1  ;;  %v104_v17 = vld [vmem:[%s232_s5] sm:$0x3f]  ;;  %v106_v19 = vstv %s230_s2 }
  0x1a   :  { %s70_s29 = sld [smem:[#allocation8]]  ;;  %58 = vst [vmem:[#allocation2] sm:$0x3f] %v174_v1  ;;  %vm118_vm5 = vcmask 1045504  }
  0x1b   :  { %s137_s30 = sld [smem:[#allocation7 + $0x80]]  ;;  %v60_v2 = vshrl.u32 %v59_v0, 7  ;;  %v62_v3 = vand.u32 127, %v59_v0 }
  0x1c   :  { %s138_s7 = sld [smem:[#allocation8 + $0x80]] }
  0x1d   :  { %s139_s8 = sld [smem:[#allocation7 + $0x100]]  ;;  %v63_v4 = vmul.u32 128, %v60_v2 }
  0x1e   :  { %s140_s9 = sld [smem:[#allocation8 + $0x100]] }
  0x1f   :  { %s141_s10 = sld [smem:[#allocation7 + $0x180]]  ;;  %v64_v5 = vadd.s32 %v63_v4, %v62_v3  ;;  %v68_v7 = vstv %s67_s4 }
  0x20   :  { %s142_s11 = sld [smem:[#allocation8 + $0x180]]  ;;  %v71_v8 = vstv %s70_s29 }
  0x21   :  { %v81_v9 = vstv %s137_s30  ;;  %vm69_vm0 = vcmp.ge.s32.totalorder %v64_v5, %v68_v7  ;;  %vm107_vm4 = vcmp.lt.s32.totalorder %v64_v5, %v106_v19  ;;  %v111_v23 = vld [vmem:[#allocation2] sm:$0x3f] }
  0x22   :  { %v84_v10 = vstv %s138_s7  ;;  %vm82_vm1 = vcmp.ge.s32.totalorder %v64_v5, %v81_v9  ;;  %v72_v13 = vsel %vm69_vm0, %v71_v8, %v66_v6 }
  0x23   :  { %v90_v11 = vstv %s139_s8  ;;  %v85_v16 = vsel %vm82_vm1, %v84_v10, %v72_v13 }
  0x24   :  { %v93_v12 = vstv %s140_s9  ;;  %vm91_vm2 = vcmp.ge.s32.totalorder %v64_v5, %v90_v11 }
  0x25   :  { %v99_v14 = vstv %s141_s10  ;;  %v94_v18 = vsel %vm91_vm2, %v93_v12, %v85_v16 }
  0x26   :  { %v102_v15 = vstv %s142_s11  ;;  %vm100_vm3 = vcmp.ge.s32.totalorder %v64_v5, %v99_v14 }
  0x27   :  { %v103_v20 = vsel %vm100_vm3, %v102_v15, %v94_v18 }
  0x28   :  { %v108_v21 = vmul.f32 %v104_v17, %v103_v20 }
  0x2a   :  { %v109_v22 = vmul.f32 %v108_v21, %v104_v17 }
  0x2c   :  { %v110_v24 = vsel %vm107_vm4, %v109_v22, 0.0 }
  0x2d   :  { %v112_v25 = vadd.f32 %v111_v23, %v110_v24 }
  0x2f   :  { %113 = vst [vmem:[#allocation2] sm:$0x3f] %v112_v25 }
  0x36   :  { %v117_v26 = vld [vmem:[#allocation2] sm:$0x3f] }
  0x37   :  { %v119_v27 = vsel %vm118_vm5, %v117_v26, 0.0 }
  0x38   :  { %v120_v28 = vrot.slane %v119_v27, 4 }
  0x3a   :  { %v121_v29 = vadd.f32 %v120_v28, %v119_v27 }
  0x3c   :  { %v122_v30 = vrot.slane %v121_v29, 2 }
  0x3e   :  { %v123_v31 = vadd.f32 %v122_v30, %v121_v29 }
  0x40   :  { %v124_v32 = vrot.slane %v123_v31, 1 }
  0x42   :  { %v125_v33 = vadd.f32 %v124_v32, %v123_v31 }
  0x44   :  { %126 = vst [vmem:[%s233_s6] sm:$0x1] %v125_v33 }

</bundles_post_ra>
